<compile_context>
chip_gen: v6e
topology: v6e:2x2x1
jax: 0.10.0
libtpu: 0.0.40
codegen_flags: <defaults>
</compile_context>

<pallas_src>
import functools

import jax
import jax.numpy as jnp
from jax.experimental import pallas as pl
from jax.experimental.pallas import tpu as pltpu


_INV_SQRT2 = 0.7071067811865476


def _erf(x):
    """Abramowitz & Stegun 7.1.26 rational erf approximation (|err| <= 1.5e-7).

    Built only from mul/add/exp plus one EUP approx-reciprocal so it lowers
    cleanly on Mosaic and keeps the divide off the VALU critical chain.
    """
    a1, a2, a3 = 0.254829592, -0.284496736, 1.421413741
    a4, a5, p = -1.453152027, 1.061405429, 0.3275911
    one = jnp.ones((), dtype=x.dtype)
    s = jnp.where(x >= 0, one, -one)
    ax = jnp.abs(x)
    t = pl.reciprocal(1.0 + p * ax, approx=True)          # EUP, not a VALU divide
    poly = ((((a5 * t + a4) * t + a3) * t + a2) * t + a1) * t
    return s * (1.0 - poly * jnp.exp(-ax * ax))


def _gelu_exact(x):
    # Matches torch.nn.GELU() (erf-based, not the tanh approximation).
    return 0.5 * x * (1.0 + _erf(x * _INV_SQRT2))


def _mlp_kernel(x_ref, w1_ref, b1_ref, w2_ref, b2_ref, out_ref, acc_ref,
                *, mm_dtype, ew_dtype):
    # x_ref : (tm, D) f32         w1_ref: (D, tI) bf16    b1_ref: (1, tI) f32
    # w2_ref: (tI, D) bf16        b2_ref: (1, D)  f32
    # out_ref: (tm, D) out_dtype  acc_ref: (tm, D) f32 scratch
    j = pl.program_id(1)

    @pl.when(j == 0)
    def _init():
        acc_ref[...] = jnp.zeros_like(acc_ref)

    # dense1 partial slab: cast x f32 -> bf16 on the VPU here (hidden under
    # MXU/DMA), accumulate in f32 on the MXU.
    x = x_ref[...].astype(mm_dtype)
    h = jnp.dot(x, w1_ref[...], preferred_element_type=jnp.float32)   # (tm, tI)

    # Bias + exact (erf) GELU.  ew_dtype=bf16 is profitable on v6e/v7x (native
    # bf16 VALU); keep f32 on v5e.
    h = _gelu_exact((h + b1_ref[...]).astype(ew_dtype))

    # dense2 partial product, accumulated in f32 VMEM scratch across I tiles.
    acc_ref[...] += jnp.dot(h.astype(mm_dtype), w2_ref[...],
                            preferred_element_type=jnp.float32)

    @pl.when(j == pl.num_programs(1) - 1)
    def _finalize():
        out_ref[...] = (acc_ref[...] + b2_ref[...]).astype(out_ref.dtype)


def prepare_mlp_params(w1, b1, w2, b2, *, matmul_dtype=jnp.bfloat16):
    """One-time weight transform (transpose to matmul-native layout + bf16 cast).

    Do this once at parameter-load time and cache the result -- it is a full
    HBM pass over the weights and must NOT sit on the per-forward-call path.
      w1: (I, D), b1: (I,)   -- PyTorch nn.Linear(hidden, intermediate) layout
      w2: (D, I), b2: (D,)   -- PyTorch nn.Linear(intermediate, hidden) layout
    """
    return {
        "w1": jnp.asarray(w1).T.astype(matmul_dtype),               # (D, I)
        "b1": jnp.asarray(b1).reshape(1, -1).astype(jnp.float32),   # (1, I)
        "w2": jnp.asarray(w2).T.astype(matmul_dtype),               # (I, D)
        "b2": jnp.asarray(b2).reshape(1, -1).astype(jnp.float32),   # (1, D)
    }


def _choose_tm(M, block_m):
    tm = min(block_m, M)
    # Guarantee >= 2 row steps when there is enough work: v7x shards the
    # "parallel" row axis over its 2 TensorCores, and the pipeline needs depth.
    if tm == M and M >= 64:
        tm = (M + 1) // 2
    if tm < M:
        tm = max(16, ((tm + 15) // 16) * 16)      # multiple of 16 (bf16 packing)
        if tm >= M:
            tm = M
    return tm


def _choose_ti(I, block_i):
    """Intermediate-dim tile: full I when it fits, otherwise the largest
    multiple of 128 <= block_i that divides I (keeps the reduction grid free of
    partial blocks, which would corrupt the accumulator)."""
    if I <= block_i:
        return I
    t = (block_i // 128) * 128
    while t >= 128:
        if I % t == 0:
            return t
        t -= 128
    return I


def _vmem_limit_bytes(tm, ti, D, out_bytes, w_bytes, resident):
    nbuf_w = 1 if resident else 2
    need = (2 * tm * D * 4                      # x tiles (double-buffered, f32)
            + 2 * tm * D * out_bytes            # out tiles (double-buffered)
            + nbuf_w * 2 * D * ti * w_bytes     # w1 + w2 tiles
            + nbuf_w * (ti + D) * 4             # biases
            + tm * ti * (4 + w_bytes)           # f32 h slab + its bf16 copy
            + tm * D * 4)                       # f32 accumulator scratch
    try:
        cap = int(pltpu.get_tpu_info().vmem_capacity_bytes)
    except Exception:                           # conservative fallback (v7x)
        cap = 64 * 1024 * 1024
    return min(need + 16 * 1024 * 1024, cap)    # real footprint + headroom


def _maybe_single_buffered(block_shape, index_map, single):
    """Single-buffer resident (constant index_map) operands: they are DMA'd
    once, so double-buffering them only wastes VMEM (critical on v7x)."""
    if single and hasattr(pl, "Buffered"):
        try:
            return pl.BlockSpec(block_shape, index_map,
                                pipeline_mode=pl.Buffered(1))
        except TypeError:                       # older BlockSpec signature
            pass
    return pl.BlockSpec(block_shape, index_map)


def mlp_forward(x, params, *, block_m=256, block_i=512, out_dtype=None,
                elementwise_dtype=jnp.float32, pruned=False):
    """MLP forward: x (B, N, D) f32, params from prepare_mlp_params().

    Dropout is identity at inference; final_output is Identity.
    """
    if pruned:   # MLP.forward short-circuit when final_output.pruned is True
        return jnp.zeros(x.shape, x.dtype)

    B, N, D = x.shape
    w1, b1, w2, b2 = params["w1"], params["b1"], params["w2"], params["b2"]
    I = w1.shape[1]
    assert w1.shape == (D, I) and w2.shape == (I, D)

    out_dtype = x.dtype if out_dtype is None else out_dtype
    mm_dtype = w1.dtype
    w_bytes = jnp.dtype(mm_dtype).itemsize
    out_bytes = jnp.dtype(out_dtype).itemsize

    M = B * N
    x2d = x.reshape(M, D)   # no-copy reshape; no jnp.pad (ragged tail block is
                            # read as garbage and out-of-bounds writes dropped)

    tm = _choose_tm(M, block_m)
    ti = _choose_ti(I, block_i)
    resident = ti == I      # weights fully resident across the whole grid
    grid = (pl.cdiv(M, tm), I // ti)

    kernel = functools.partial(_mlp_kernel, mm_dtype=mm_dtype,
                               ew_dtype=elementwise_dtype)

    cost = pl.CostEstimate(
        flops=4 * M * D * I,                       # two matmuls
        transcendentals=2 * M * I,                 # exp + approx-recip per GELU
        bytes_accessed=(M * D * 4 + 2 * D * I * w_bytes
                        + (I + D) * 4 + M * D * out_bytes),
    )

    out = pl.pallas_call(
        kernel,
        out_shape=jax.ShapeDtypeStruct((M, D), out_dtype),
        grid_spec=pltpu.PrefetchScalarGridSpec(
            num_scalar_prefetch=0,
            grid=grid,
            in_specs=[
                pl.BlockSpec((tm, D), lambda i, j: (i, 0)),             # x rows
                _maybe_single_buffered((D, ti), lambda i, j: (0, j), resident),
                _maybe_single_buffered((1, ti), lambda i, j: (0, j), resident),
                _maybe_single_buffered((ti, D), lambda i, j: (j, 0), resident),
                _maybe_single_buffered((1, D), lambda i, j: (0, 0), True),
            ],
            out_specs=pl.BlockSpec((tm, D), lambda i, j: (i, 0)),
            scratch_shapes=[pltpu.VMEM((tm, D), jnp.float32)],
        ),
        compiler_params=pltpu.CompilerParams(
            dimension_semantics=("parallel", "arbitrary"),
            vmem_limit_bytes=_vmem_limit_bytes(tm, ti, D, out_bytes, w_bytes,
                                               resident),
        ),
        cost_estimate=cost,
    )(x2d, w1, b1, w2, b2)

    # TODO(synk): when D < 128 the store is a masked vst.msk; repacking the
    # output to a lane-dense (M//k, k*D) slab wrapper-side would recover the
    # store overhead, but real transformer D is a multiple of 128 so it is
    # skipped here.
    return out.reshape(B, N, D)


def reference_forward(x, w1, b1, w2, b2):
    """Pure-JAX f32 reference reproducing the PyTorch forward semantics."""
    h = jnp.einsum('bnd,id->bni', x, w1) + b1
    h = jax.nn.gelu(h, approximate=False)
    return jnp.einsum('bni,di->bnd', h, w2) + b2


if __name__ == "__main__":
    # config: hidden_size=32, intermediate_size=128, batch=2, seq=128
    B, N, D, I = 2, 128, 32, 128

    key = jax.random.PRNGKey(0)
    kx, kw1, kb1, kw2, kb2 = jax.random.split(key, 5)
    x = jax.random.normal(kx, (B, N, D), dtype=jnp.float32)
    w1 = jax.random.normal(kw1, (I, D), dtype=jnp.float32) * 0.05
    b1 = jax.random.normal(kb1, (I,), dtype=jnp.float32) * 0.02
    w2 = jax.random.normal(kw2, (D, I), dtype=jnp.float32) * 0.05
    b2 = jax.random.normal(kb2, (D,), dtype=jnp.float32) * 0.02

    # One-time weight preparation (parameter-load time, cached in real use).
    params = prepare_mlp_params(w1, b1, w2, b2)

    out = mlp_forward(x, params)
    out = jax.block_until_ready(out)

    ref = reference_forward(x, w1, b1, w2, b2)
    assert out.shape == (B, N, D)
    # bf16 matmul operands -> tolerance loosened vs the f32 reference.
    assert jnp.allclose(out, ref, atol=2e-2, rtol=2e-2), "mismatch vs reference"
    print("KERNEL_OK")
</pallas_src>

<mosaic_0001>
module attributes {stable_mosaic.version = 11 : i64} {
  func.func @_mlp_kernel(%arg0: i32, %arg1: i32, %arg2: memref<128x32xf32, #tpu.memory_space<vmem>>, %arg3: memref<32x128xbf16, #tpu.memory_space<vmem>>, %arg4: memref<1x128xf32, #tpu.memory_space<vmem>>, %arg5: memref<128x32xbf16, #tpu.memory_space<vmem>>, %arg6: memref<1x32xf32, #tpu.memory_space<vmem>>, %arg7: memref<128x32xf32, #tpu.memory_space<vmem>>, %arg8: memref<128x32xf32, #tpu.memory_space<vmem>>) attributes {dimension_semantics = [#tpu.dimension_semantics<parallel>, #tpu.dimension_semantics<arbitrary>], iteration_bounds = array<i64: 2, 1>, scalar_prefetch = 0 : i64, scratch_operands = 1 : i64, tpu.core_type = #tpu.core_type<tc>, window_params = [{transform_indices = @transform_0, window_bounds = array<i64: 128, 32>}, {pipeline_mode = #tpu.pipeline_mode<synchronous>, transform_indices = @transform_1, window_bounds = array<i64: 32, 128>}, {pipeline_mode = #tpu.pipeline_mode<synchronous>, transform_indices = @transform_2, window_bounds = array<i64: 1, 128>}, {pipeline_mode = #tpu.pipeline_mode<synchronous>, transform_indices = @transform_3, window_bounds = array<i64: 128, 32>}, {pipeline_mode = #tpu.pipeline_mode<synchronous>, transform_indices = @transform_4, window_bounds = array<i64: 1, 32>}, {transform_indices = @transform_5, window_bounds = array<i64: 128, 32>}]} {
    %c0_i32 = arith.constant 0 : i32
    %0 = arith.cmpi eq, %arg1, %c0_i32 : i32
    %1 = arith.extui %0 : i1 to i32
    %c0_i32_0 = arith.constant 0 : i32
    %2 = arith.cmpi ne, %1, %c0_i32_0 : i32
    scf.if %2 {
      %cst_31 = arith.constant 0.000000e+00 : f32
      %60 = vector.broadcast %cst_31 : f32 to vector<128x32xf32>
      %c0_32 = arith.constant 0 : index
      %c0_33 = arith.constant 0 : index
      %61 = vector.load %arg8[%c0_32, %c0_33] : memref<128x32xf32, #tpu.memory_space<vmem>>, vector<128x32xf32>
      tpu.vector_store %arg8[%c0_32, %c0_33], %60 {strides = array<i32>} : memref<128x32xf32, #tpu.memory_space<vmem>>, vector<128x32xf32>,
    } else {
    }
    %c0 = arith.constant 0 : index
    %c0_1 = arith.constant 0 : index
    %3 = vector.load %arg2[%c0, %c0_1] : memref<128x32xf32, #tpu.memory_space<vmem>>, vector<128x32xf32>
    %4 = arith.truncf %3 : vector<128x32xf32> to vector<128x32xbf16>
    %c0_2 = arith.constant 0 : index
    %c0_3 = arith.constant 0 : index
    %5 = vector.load %arg3[%c0_2, %c0_3] : memref<32x128xbf16, #tpu.memory_space<vmem>>, vector<32x128xbf16>
    %cst = arith.constant dense<0.000000e+00> : vector<128x128xf32>
    %6 = tpu.matmul %4, %5, %cst {dimension_numbers = #tpu.dot_dimension_numbers<[1], [0], [0], [1], [0, 0, 1, 1], [], []>} : vector<128x32xbf16>, vector<32x128xbf16>, vector<128x128xf32> -> vector<128x128xf32>
    %c0_4 = arith.constant 0 : index
    %c0_5 = arith.constant 0 : index
    %7 = vector.load %arg4[%c0_4, %c0_5] : memref<1x128xf32, #tpu.memory_space<vmem>>, vector<1x128xf32>
    %8 = vector.broadcast %7 : vector<1x128xf32> to vector<128x128xf32>
    %9 = arith.addf %6, %8 : vector<128x128xf32>
    %cst_6 = arith.constant 5.000000e-01 : f32
    %10 = vector.broadcast %cst_6 : f32 to vector<128x128xf32>
    %11 = arith.mulf %10, %9 : vector<128x128xf32>
    %cst_7 = arith.constant 0.707106769 : f32
    %12 = vector.broadcast %cst_7 : f32 to vector<128x128xf32>
    %13 = arith.mulf %9, %12 : vector<128x128xf32>
    %cst_8 = arith.constant 0.000000e+00 : f32
    %14 = vector.broadcast %cst_8 : f32 to vector<128x128xf32>
    %15 = arith.cmpf oge, %13, %14 : vector<128x128xf32>
    %cst_9 = arith.constant 0.000000e+00 : f32
    %cst_10 = arith.constant 1.000000e+00 : f32
    %16 = arith.subf %cst_9, %cst_10 : f32
    %cst_11 = arith.constant 1.000000e+00 : f32
    %17 = vector.broadcast %cst_11 : f32 to vector<128x128xf32>
    %18 = vector.broadcast %16 : f32 to vector<128x128xf32>
    %19 = arith.select %15, %17, %18 : vector<128x128xi1>, vector<128x128xf32>
    %20 = math.absf %13 : vector<128x128xf32>
    %cst_12 = arith.constant 0.327591091 : f32
    %21 = vector.broadcast %cst_12 : f32 to vector<128x128xf32>
    %22 = arith.mulf %21, %20 : vector<128x128xf32>
    %cst_13 = arith.constant 1.000000e+00 : f32
    %23 = vector.broadcast %cst_13 : f32 to vector<128x128xf32>
    %24 = arith.addf %23, %22 : vector<128x128xf32>
    %25 = tpu.reciprocal %24 {approx = true} : vector<128x128xf32> -> vector<128x128xf32>
    %cst_14 = arith.constant 1.06140542 : f32
    %26 = vector.broadcast %cst_14 : f32 to vector<128x128xf32>
    %27 = arith.mulf %26, %25 : vector<128x128xf32>
    %cst_15 = arith.constant -1.45315206 : f32
    %28 = vector.broadcast %cst_15 : f32 to vector<128x128xf32>
    %29 = arith.addf %27, %28 : vector<128x128xf32>
    %30 = arith.mulf %29, %25 : vector<128x128xf32>
    %cst_16 = arith.constant 1.42141378 : f32
    %31 = vector.broadcast %cst_16 : f32 to vector<128x128xf32>
    %32 = arith.addf %30, %31 : vector<128x128xf32>
    %33 = arith.mulf %32, %25 : vector<128x128xf32>
    %cst_17 = arith.constant -0.284496725 : f32
    %34 = vector.broadcast %cst_17 : f32 to vector<128x128xf32>
    %35 = arith.addf %33, %34 : vector<128x128xf32>
    %36 = arith.mulf %35, %25 : vector<128x128xf32>
    %cst_18 = arith.constant 0.254829586 : f32
    %37 = vector.broadcast %cst_18 : f32 to vector<128x128xf32>
    %38 = arith.addf %36, %37 : vector<128x128xf32>
    %39 = arith.mulf %38, %25 : vector<128x128xf32>
    %cst_19 = arith.constant 0.000000e+00 : f32
    %40 = vector.broadcast %cst_19 : f32 to vector<128x128xf32>
    %41 = arith.subf %40, %20 : vector<128x128xf32>
    %42 = arith.mulf %41, %20 : vector<128x128xf32>
    %43 = math.exp %42 : vector<128x128xf32>
    %44 = arith.mulf %39, %43 : vector<128x128xf32>
    %cst_20 = arith.constant 1.000000e+00 : f32
    %45 = vector.broadcast %cst_20 : f32 to vector<128x128xf32>
    %46 = arith.subf %45, %44 : vector<128x128xf32>
    %47 = arith.mulf %19, %46 : vector<128x128xf32>
    %cst_21 = arith.constant 1.000000e+00 : f32
    %48 = vector.broadcast %cst_21 : f32 to vector<128x128xf32>
    %49 = arith.addf %48, %47 : vector<128x128xf32>
    %50 = arith.mulf %11, %49 : vector<128x128xf32>
    %c0_22 = arith.constant 0 : index
    %c0_23 = arith.constant 0 : index
    %51 = vector.load %arg8[%c0_22, %c0_23] : memref<128x32xf32, #tpu.memory_space<vmem>>, vector<128x32xf32>
    %52 = arith.truncf %50 : vector<128x128xf32> to vector<128x128xbf16>
    %c0_24 = arith.constant 0 : index
    %c0_25 = arith.constant 0 : index
    %53 = vector.load %arg5[%c0_24, %c0_25] : memref<128x32xbf16, #tpu.memory_space<vmem>>, vector<128x32xbf16>
    %cst_26 = arith.constant dense<0.000000e+00> : vector<128x32xf32>
    %54 = tpu.matmul %52, %53, %cst_26 {dimension_numbers = #tpu.dot_dimension_numbers<[1], [0], [0], [1], [0, 0, 1, 1], [], []>} : vector<128x128xbf16>, vector<128x32xbf16>, vector<128x32xf32> -> vector<128x32xf32>
    %55 = arith.addf %51, %54 : vector<128x32xf32>
    %c0_27 = arith.constant 0 : index
    %c0_28 = arith.constant 0 : index
    %56 = vector.load %arg8[%c0_27, %c0_28] : memref<128x32xf32, #tpu.memory_space<vmem>>, vector<128x32xf32>
    tpu.vector_store %arg8[%c0_27, %c0_28], %55 {strides = array<i32>} : memref<128x32xf32, #tpu.memory_space<vmem>>, vector<128x32xf32>,
    %c0_i32_29 = arith.constant 0 : i32
    %57 = arith.cmpi eq, %arg1, %c0_i32_29 : i32
    %58 = arith.extui %57 : i1 to i32
    %c0_i32_30 = arith.constant 0 : i32
    %59 = arith.cmpi ne, %58, %c0_i32_30 : i32
    scf.if %59 {
      %c0_31 = arith.constant 0 : index
      %c0_32 = arith.constant 0 : index
      %60 = vector.load %arg8[%c0_31, %c0_32] : memref<128x32xf32, #tpu.memory_space<vmem>>, vector<128x32xf32>
      %c0_33 = arith.constant 0 : index
      %c0_34 = arith.constant 0 : index
      %61 = vector.load %arg6[%c0_33, %c0_34] : memref<1x32xf32, #tpu.memory_space<vmem>>, vector<1x32xf32>
      %62 = vector.broadcast %61 : vector<1x32xf32> to vector<128x32xf32>
      %63 = arith.addf %60, %62 : vector<128x32xf32>
      %c0_35 = arith.constant 0 : index
      %c0_36 = arith.constant 0 : index
      %64 = vector.load %arg7[%c0_35, %c0_36] : memref<128x32xf32, #tpu.memory_space<vmem>>, vector<128x32xf32>
      tpu.vector_store %arg7[%c0_35, %c0_36], %63 {strides = array<i32>} : memref<128x32xf32, #tpu.memory_space<vmem>>, vector<128x32xf32>,
    } else {
    }
    return
  }
  func.func @transform_0(%arg0: i32, %arg1: i32) -> (i32, i32) {
    %c0_i32 = arith.constant 0 : i32
    %c0_i32_0 = arith.constant 0 : i32
    return %arg0, %c0_i32 : i32, i32
  }
  func.func @transform_1(%arg0: i32, %arg1: i32) -> (i32, i32) {
    %c0_i32 = arith.constant 0 : i32
    %c0_i32_0 = arith.constant 0 : i32
    return %c0_i32, %arg1 : i32, i32
  }
  func.func @transform_2(%arg0: i32, %arg1: i32) -> (i32, i32) {
    %c0_i32 = arith.constant 0 : i32
    %c0_i32_0 = arith.constant 0 : i32
    return %c0_i32, %arg1 : i32, i32
  }
  func.func @transform_3(%arg0: i32, %arg1: i32) -> (i32, i32) {
    %c0_i32 = arith.constant 0 : i32
    %c0_i32_0 = arith.constant 0 : i32
    return %arg1, %c0_i32 : i32, i32
  }
  func.func @transform_4(%arg0: i32, %arg1: i32) -> (i32, i32) {
    %c0_i32 = arith.constant 0 : i32
    %c0_i32_0 = arith.constant 0 : i32
    %c0_i32_1 = arith.constant 0 : i32
    return %c0_i32, %c0_i32_0 : i32, i32
  }
  func.func @transform_5(%arg0: i32, %arg1: i32) -> (i32, i32) {
    %c0_i32 = arith.constant 0 : i32
    %c0_i32_0 = arith.constant 0 : i32
    return %arg0, %c0_i32 : i32, i32
  }
}

</mosaic_0001>

<bundles_post_ra>
// kernel: tpu_custom_call.1
= control target key start
LH: loop header
LB: loop body
LE: loop exit
PB: predicated region body
PF: predicated region fallthrough
CT: control target
= control target key end

     0   :  { %s1566_s18 = smov 0   ;;  %s1568_s19 = smov 0   ;;  %s2158_s0 = inlined_call_operand.vmem [shape: f32[256,32], index: 0, kind: input, shape index: {}]   ;;  %s2159_s1 = inlined_call_operand.vmem [shape: bf16[32,128], index: 1, kind: input, shape index: {}]   ;;  %s2160_s2 = inlined_call_operand.vmem [shape: f32[1,128], index: 2, kind: input, shape index: {}]   ;;  %s2161_s3 = inlined_call_operand.vmem [shape: bf16[128,32], index: 3, kind: input, shape index: {}]   ;;  %s2162_s4 = inlined_call_operand.vmem [shape: f32[1,32], index: 4, kind: input, shape index: {}]   ;;  %s2163_s5 = inlined_call_operand.vmem [shape: f32[256,32], index: 5, kind: output, shape index: {}]  }
   0x1   :  { %s1570_s20 = smov 0  }
   0x2 LB: > { %s27_s21 = sadd.s32 1, %s1528_s19  ;;  %p1289_p0 = scmp.ge.s32.totalorder %s1532_s20, 1  ;;  %s1532_s20 = sphi %s1570_s20, %s15_s20   ;;  %s1528_s19 = sphi %s1568_s19, %s2165_s19   ;;  %s1524_s18 = sphi %s1566_s18, %s2164_s18  }
   0x3   : > { %p29_p1 = scmp.ge.s32.totalorder %s27_s21, 2  ;;  %p228_p2 = scmp.lt.s32.totalorder %s1532_s20, 3 }
   0x5   : > { %s2167_s21 = smov (%p29_p1, %s27_s21), 0  ;;  %p229_p3 = pnand %p1289_p0, %p228_p2 }
   0x6   : > { %s1290_s24 = sshll.u32 (!%p229_p3), %s1524_s18, 4 }
   0x7   : > { %232 = sbr.rel (%p229_p3) target bundleno = 554 (0x22a), region = 40  ;;  %p269_p4 = scmp.lt.s32.totalorder (!%p229_p3), %s1290_s24, 31 }
   0xc   : > { %v1436_v0 = vld [vmem:[%s2159_s1 + $0x8] sm:$0xff]   ;;  %v1437_v1 = vld [vmem:[%s2159_s1] sm:$0xff]   ;;  %s2169_s24 = smov (!%p269_p4, %s1290_s24), 31  ;;  %vm298_vm0 = vcmask 261120   ;;  %v1438_v26 = vld [vmem:[%s2161_s3 + $0x38] sm:$0xff]  }
   0xd   : > { %1342 = vmatprep.subr.bf16.mxu0 %v1436_v0  ;;  %s1291_s27 = sshll.u32 %s2169_s24, 3  ;;  %1394 = vmatprep.subr.bf16.mxu1 %v1438_v26  ;;  %v1439_v27 = vld [vmem:[%s2161_s3 + $0x30] sm:$0xff]   ;;  %v1440_v28 = vld [vmem:[%s2161_s3 + $0x28] sm:$0xff]   ;;  %v1441_v29 = vld [vmem:[%s2161_s3 + $0x20] sm:$0xff]  }
   0xe   : > { %1343 = vmatpush3.bf16.msra.mxu0 %v1436_v0  ;;  %s1598_s30 = scalar_lea.vmem %s2158_s0, %s1291_s27  ;;  %1402 = vmatpush3.bf16.msra.mxu1 %v1438_v26  ;;  %v1442_v30 = vld [vmem:[%s2161_s3 + $0x18] sm:$0xff]   ;;  %v1443_v31 = vld [vmem:[%s2161_s3 + $0x10] sm:$0xff]   ;;  %v1444_v32 = vld [vmem:[%s2161_s3 + $0x8] sm:$0xff]   ;;  %s2087_s8 = scalar_lea.vmem %s2163_s5, %s1291_s27 }
   0xf   : > { %1344 = vmatprep.subr.bf16.mxu0 %v1437_v1  ;;  %v315_v2 = vld [vmem:[%s1598_s30] sm:$0xff]  ;;  %v316_v3 = vld [vmem:[%s1598_s30 + $0x8] sm:$0xff]  ;;  %v317_v4 = vld [vmem:[%s1598_s30 + $0x10] sm:$0xff]  ;;  %1395 = vmatprep.subr.bf16.mxu1 %v1439_v27 }
  0x10   : > { %v331_v5 = vpack.c.bf16 %v316_v3, %v315_v2  ;;  %v318_v6 = vld [vmem:[%s1598_s30 + $0x18] sm:$0xff]  ;;  %v319_v7 = vld [vmem:[%s1598_s30 + $0x20] sm:$0xff]  ;;  %v320_v8 = vld [vmem:[%s1598_s30 + $0x28] sm:$0xff] }
  0x11   : > { %v332_v9 = vpack.c.bf16 %v318_v6, %v317_v4  ;;  %v333_v10 = vpack.c.bf16 %v320_v8, %v319_v7  ;;  %v321_v11 = vld [vmem:[%s1598_s30 + $0x30] sm:$0xff]  ;;  %v322_v12 = vld [vmem:[%s1598_s30 + $0x38] sm:$0xff]  ;;  %v323_v13 = vld [vmem:[%s1598_s30 + $0x40] sm:$0xff] }
  0x12   : > { %1345 = vmatpush3.bf16.msra.mxu0 %v1437_v1  ;;  %1346 = vmatprep.mubr.msk.bf16.mxu0 %vm298_vm0, %v331_v5  ;;  %v324_v14 = vld [vmem:[%s1598_s30 + $0x48] sm:$0xff]  ;;  %v334_v15 = vpack.c.bf16 %v322_v12, %v321_v11  ;;  %v325_v17 = vld [vmem:[%s1598_s30 + $0x50] sm:$0xff]  ;;  %v326_v18 = vld [vmem:[%s1598_s30 + $0x58] sm:$0xff] }
  0x13   : > { %v335_v16 = vpack.c.bf16 %v324_v14, %v323_v13  ;;  %v327_v19 = vld [vmem:[%s1598_s30 + $0x60] sm:$0xff]  ;;  %v328_v20 = vld [vmem:[%s1598_s30 + $0x68] sm:$0xff]  ;;  %v336_v21 = vpack.c.bf16 %v326_v18, %v325_v17  ;;  %v329_v23 = vld [vmem:[%s1598_s30 + $0x70] sm:$0xff]  ;;  %1362 = vmatprep.subr.bf16.mxu0 %v1438_v26  ;;  %1403 = vmatpush3.bf16.msra.mxu1 %v1439_v27 }
  0x14   : > { %v337_v22 = vpack.c.bf16 %v328_v20, %v327_v19  ;;  %v330_v24 = vld [vmem:[%s1598_s30 + $0x78] sm:$0xff]  ;;  %1396 = vmatprep.subr.bf16.mxu1 %v1440_v28  ;;  %v1445_v33 = vld [vmem:[%s2161_s3] sm:$0xff]   ;;  %v1534_v19 = vmov -1.0  }
  0x15   : > { %1347 = vmatmul.mubr.msk.bf16.vlgmr.msra.gmra.mxu0 %vm298_vm0, %v332_v9  ;;  %v338_v25 = vpack.c.bf16 %v330_v24, %v329_v23  ;;  %v1651_v34 = vld [vmem:[%s2160_s2] ss:$0 sm:$0xff] }
  0x16   : > { %1350 = vmatprep.mubr.msk.bf16.mxu0 %vm298_vm0, %v333_v10  ;;  %1363 = vmatpush3.bf16.msra.mxu0 %v1438_v26 }
  0x17   : > { %1364 = vmatprep.subr.bf16.mxu0 %v1439_v27  ;;  %1404 = vmatpush3.bf16.msra.mxu1 %v1440_v28 }
  0x18   : > { %1397 = vmatprep.subr.bf16.mxu1 %v1441_v29 }
  0x1a   : > { %1365 = vmatpush3.bf16.msra.mxu0 %v1439_v27 }
  0x1b   : > { %1366 = vmatprep.subr.bf16.mxu0 %v1440_v28  ;;  %1405 = vmatpush3.bf16.msra.mxu1 %v1441_v29 }
  0x1c   : > { %1398 = vmatprep.subr.bf16.mxu1 %v1442_v30 }
  0x1d   : > { %1351 = vmatmul.mubr.msk.bf16.gmra.mxu0 %vm298_vm0, %v334_v15 }
  0x1e   : > { %1354 = vmatprep.mubr.msk.bf16.mxu0 %vm298_vm0, %v335_v16  ;;  %1367 = vmatpush3.bf16.msra.mxu0 %v1440_v28 }
  0x1f   : > { %1368 = vmatprep.subr.bf16.mxu0 %v1441_v29  ;;  %1406 = vmatpush3.bf16.msra.mxu1 %v1442_v30 }
  0x20   : > { %1399 = vmatprep.subr.bf16.mxu1 %v1443_v31 }
  0x22   : > { %1369 = vmatpush3.bf16.msra.mxu0 %v1441_v29 }
  0x23   : > { %1370 = vmatprep.subr.bf16.mxu0 %v1442_v30  ;;  %1407 = vmatpush3.bf16.msra.mxu1 %v1443_v31 }
  0x24   : > { %1400 = vmatprep.subr.bf16.mxu1 %v1444_v32 }
  0x25   : > { %1355 = vmatmul.mubr.msk.bf16.gmra.mxu0 %vm298_vm0, %v336_v21 }
  0x26   : > { %1358 = vmatprep.mubr.msk.bf16.mxu0 %vm298_vm0, %v337_v22  ;;  %1371 = vmatpush3.bf16.msra.mxu0 %v1442_v30 }
  0x27   : > { %1372 = vmatprep.subr.bf16.mxu0 %v1443_v31  ;;  %1408 = vmatpush3.bf16.msra.mxu1 %v1444_v32 }
  0x28   : > { %1401 = vmatprep.subr.bf16.mxu1 %v1445_v33 }
  0x2a   : > { %1373 = vmatpush3.bf16.msra.mxu0 %v1443_v31 }
  0x2b   : > { %1374 = vmatprep.subr.bf16.mxu0 %v1444_v32  ;;  %1409 = vmatpush3.bf16.msra.mxu1 %v1445_v33 }
  0x2d   : > { %1359 = vmatmul.mubr.msk.bf16.gmra.mxu0 %vm298_vm0, %v338_v25 }
  0x2e   : > { %1375 = vmatpush3.bf16.msra.mxu0 %v1444_v32 }
  0x2f   : > { %1376 = vmatprep.subr.bf16.mxu0 %v1445_v33 }
  0x32   : > { %1377 = vmatpush3.bf16.msra.mxu0 %v1445_v33 }
  0xd5   : > { %v1348_v35 = vpop.f32.mrf.mxu0 }
  0xd6   : > { %v430_v36 = vadd.f32 %v1348_v35, %v1651_v34 }
  0xd7   : > { %v421_v37 = vpop.f32.mrf.mxu0 }
  0xd8   : > { %v502_v38 = vmul.f32 0.70710677, %v430_v36  ;;  %v422_v39 = vadd.f32 %v1651_v34, %v421_v37  ;;  %v1689_v11 = vmul.f32 0.5, %v430_v36 }
  0xd9   : > { %v1349_v40 = vpop.f32.mrf.mxu0 }
  0xda   : > { %v550_v41 = vand.u32 2147483647, %v502_v38  ;;  %v500_v42 = vmul.f32 0.70710677, %v422_v39  ;;  %v433_v43 = vadd.f32 %v1349_v40, %v1651_v34  ;;  %vm518_vm1 = vcmp.ge.f32.partialorder %v502_v38, 0.0 }
  0xdb   : > { %v424_v44 = vpop.f32.mrf.mxu0  ;;  %v1691_v12 = vmul.f32 0.5, %v422_v39  ;;  %v1696_v20 = vsel %vm518_vm1, 1.0, %v1534_v19 }
  0xdc   : > { %v566_v45 = vmul.f32 0.3275911, %v550_v41  ;;  %v548_v46 = vand.u32 2147483647, %v500_v42  ;;  %v1656_v47 = vmul.f32 0.70710677, %v433_v43  ;;  %v425_v48 = vadd.f32 %v1651_v34, %v424_v44 }
  0xdd   : > { %v1352_v49 = vpop.f32.mrf.mxu0  ;;  %v758_v6 = vsub.f32 0.0, %v550_v41  ;;  %vm516_vm2 = vcmp.ge.f32.partialorder %v500_v42, 0.0  ;;  %v1705_v26 = vmul.f32 0.5, %v433_v43 }
  0xde   : > { %v582_v50 = vadd.f32 1.0, %v566_v45  ;;  %v564_v51 = vmul.f32 0.3275911, %v548_v46  ;;  %v551_v52 = vand.u32 2147483647, %v1656_v47  ;;  %v1666_v59 = vadd.f32 %v1352_v49, %v1651_v34 }
  0xdf   : > { %v1660_v53 = vmul.f32 0.70710677, %v425_v48  ;;  %v437_v55 = vpop.f32.mrf.mxu0  ;;  %v774_v16 = vmul.f32 %v758_v6, %v550_v41  ;;  %v756_v17 = vsub.f32 0.0, %v548_v46  ;;  %v1699_v21 = vsel %vm516_vm2, 1.0, %v1534_v19 }
  0xe0   : > { %1446 = vrcp.f32 %v582_v50  ;;  %v580_v54 = vadd.f32 1.0, %v564_v51  ;;  %v567_v56 = vmul.f32 0.3275911, %v551_v52  ;;  %v1670_v62 = vmul.f32 0.70710677, %v1666_v59 }
  0xe1   : > { %v1663_v57 = vand.u32 2147483647, %v1660_v53  ;;  %v1353_v61 = vpop.f32.mrf.mxu0  ;;  %v759_v23 = vsub.f32 0.0, %v551_v52  ;;  %vm519_vm3 = vcmp.ge.f32.partialorder %v1656_v47, 0.0  ;;  %v1709_v29 = vmul.f32 0.5, %v425_v48 }
  0xe2   : > { %1448 = vrcp.f32 %v580_v54  ;;  %v583_v58 = vadd.f32 1.0, %v567_v56  ;;  %v1673_v0 = vand.u32 2147483647, %v1670_v62  ;;  %v1676_v1 = vadd.f32 %v1353_v61, %v1651_v34 }
  0xe3   : > { %v565_v60 = vmul.f32 0.3275911, %v1663_v57  ;;  %v440_v5 = vpop.f32.mrf.mxu0  ;;  %v792_v33 = vmul.f32 1.442695, %v774_v16  ;;  %v772_v35 = vmul.f32 %v756_v17, %v548_v46  ;;  %vm517_vm4 = vcmp.ge.f32.partialorder %v1660_v53, 0.0 }
  0xe4   : > { %1450 = vrcp.f32 %v583_v58  ;;  %v570_v2 = vmul.f32 0.3275911, %v1673_v0  ;;  %v1680_v3 = vmul.f32 0.70710677, %v1676_v1  ;;  %v775_v39 = vmul.f32 %v759_v23, %v551_v52 }
  0xe5   : > { %v581_v63 = vadd.f32 1.0, %v565_v60  ;;  %v1356_v13 = vpop.f32.mrf.mxu0  ;;  %v438_v40 = vadd.f32 %v1651_v34, %v437_v55  ;;  %v1722_v41 = vsel %vm519_vm3, 1.0, %v1534_v19  ;;  %v757_v43 = vsub.f32 0.0, %v1663_v57 }
  0xe6   : > { %v586_v4 = vadd.f32 1.0, %v570_v2  ;;  %v1683_v7 = vand.u32 2147483647, %v1680_v3  ;;  %v1712_v30 = vadd.f32 %v1356_v13, %v1651_v34  ;;  %v788_v50 = vmul.f32 1.442695, %v772_v35 }
  0xe7   : > { %1452 = vrcp.f32 %v581_v63  ;;  %v453_v31 = vpop.f32.mrf.mxu0  ;;  %v1737_v47 = vsel %vm517_vm4, 1.0, %v1534_v19  ;;  %v794_v55 = vmul.f32 1.442695, %v775_v39  ;;  %v1740_v56 = vmul.f32 0.70710677, %v438_v40 }
  0xe8   : > { %1454 = vrcp.f32 %v586_v4  ;;  %v571_v10 = vmul.f32 0.3275911, %v1683_v7  ;;  %v1727_v44 = vadd.f32 %v1651_v34, %v453_v31  ;;  %v1732_v49 = vmul.f32 0.70710677, %v1712_v30 }
  0xe9   : > { %v773_v61 = vmul.f32 %v757_v43, %v1663_v57  ;;  %v1747_v63 = vadd.f32 %v1651_v34, %v440_v5  ;;  %vm522_vm5 = vcmp.ge.f32.partialorder %v1670_v62, 0.0  ;;  %v762_v57 = vsub.f32 0.0, %v1673_v0 }
  0xea   : > { %v587_v18 = vadd.f32 1.0, %v571_v10  ;;  %v1750_v53 = vmul.f32 0.70710677, %v1727_v44  ;;  %v1762_v5 = vmul.f32 0.5, %v438_v40  ;;  %v552_v16 = vand.u32 2147483647, %v1740_v56 }
  0xeb   : > { %v778_v39 = vmul.f32 %v762_v57, %v1673_v0  ;;  %vm523_vm6 = vcmp.ge.f32.partialorder %v1680_v3, 0.0  ;;  %vm526_vm7 = vcmp.ge.f32.partialorder %v1732_v49, 0.0  ;;  %vm520_vm11 = vcmp.ge.f32.partialorder %v1740_v56, 0.0 }
  0xec   : > { %1456 = vrcp.f32 %v587_v18  ;;  %v568_v40 = vmul.f32 0.3275911, %v552_v16  ;;  %vm524_vm8 = vcmp.ge.f32.partialorder %v1750_v53, 0.0 }
  0xed   : > { %v1685_v8 = vpop.eup %1446  ;;  %1458 = vpow2.f32 %v792_v33 }
  0xee   : > { %v614_v9 = vmul.f32 1.0614054, %v1685_v8  ;;  %1460 = vpow2.f32 %v788_v50 }
  0xef   : > { %v1693_v14 = vpop.eup %1448  ;;  %1462 = vpow2.f32 %v794_v55 }
  0xf0   : > { %v630_v15 = vadd.f32 -1.4531521, %v614_v9  ;;  %v612_v22 = vmul.f32 1.0614054, %v1693_v14  ;;  %v1755_v9 = vand.u32 2147483647, %v1732_v49 }
  0xf1   : > { %v1702_v24 = vpop.eup %1450 }
  0xf2   : > { %v646_v25 = vmul.f32 %v1685_v8, %v630_v15  ;;  %v628_v27 = vadd.f32 -1.4531521, %v612_v22  ;;  %v615_v28 = vmul.f32 1.0614054, %v1702_v24  ;;  %v1758_v15 = vmul.f32 0.5, %v1666_v59 }
  0xf3   : > { %v1766_v22 = vand.u32 2147483647, %v1750_v53  ;;  %v790_v59 = vmul.f32 1.442695, %v773_v61  ;;  %v800_v61 = vmul.f32 1.442695, %v778_v39 }
  0xf4   : > { %v662_v32 = vadd.f32 1.4214138, %v646_v25  ;;  %v1715_v36 = vpop.eup %1452  ;;  %v644_v37 = vmul.f32 %v1693_v14, %v628_v27  ;;  %v631_v38 = vadd.f32 -1.4531521, %v615_v28  ;;  %v1772_v27 = vmul.f32 0.70710677, %v1747_v63 }
  0xf5   : > { %v613_v42 = vmul.f32 1.0614054, %v1715_v36  ;;  %v1742_v58 = vpop.eup %1454  ;;  %v574_v28 = vmul.f32 0.3275911, %v1755_v9  ;;  %v572_v35 = vmul.f32 0.3275911, %v1766_v22 }
  0xf6   : > { %v678_v45 = vmul.f32 %v1685_v8, %v662_v32  ;;  %v660_v46 = vadd.f32 1.4214138, %v644_v37  ;;  %v647_v48 = vmul.f32 %v1702_v24, %v631_v38  ;;  %v618_v6 = vmul.f32 1.0614054, %v1742_v58  ;;  %v1357_v37 = vpop.f32.mrf.mxu0 }
  0xf7   : > { %v629_v51 = vadd.f32 -1.4531521, %v613_v42  ;;  %v1782_v38 = vsel %vm522_vm5, 1.0, %v1534_v19  ;;  %v760_v42 = vsub.f32 0.0, %v552_v16  ;;  %vm521_vm12 = vcmp.ge.f32.partialorder %v1772_v27, 0.0 }
  0xf8   : > { %v676_v52 = vmul.f32 %v1693_v14, %v660_v46  ;;  %v663_v54 = vadd.f32 1.4214138, %v647_v48  ;;  %v694_v2 = vadd.f32 -0.28449672, %v678_v45  ;;  %v634_v18 = vadd.f32 -1.4531521, %v618_v6  ;;  %v456_v57 = vpop.f32.mrf.mxu0 }
  0xf9   : > { %v645_v60 = vmul.f32 %v1715_v36, %v629_v51  ;;  %v1768_v23 = vpop.eup %1456  ;;  %v763_v46 = vsub.f32 0.0, %v1683_v7  ;;  %v588_v48 = vadd.f32 1.0, %v572_v35  ;;  %v553_v51 = vand.u32 2147483647, %v1772_v27 }
  0xfa   : > { %v679_v4 = vmul.f32 %v1702_v24, %v663_v54  ;;  %v692_v10 = vadd.f32 -0.28449672, %v676_v52  ;;  %v710_v25 = vmul.f32 %v1685_v8, %v694_v2  ;;  %v619_v33 = vmul.f32 1.0614054, %v1768_v23  ;;  %v1459_v0 = vpop.eup %1458 }
  0xfb   : > { %v661_v13 = vadd.f32 1.4214138, %v645_v60  ;;  %v650_v45 = vmul.f32 %v1742_v58, %v634_v18  ;;  %v590_v52 = vadd.f32 1.0, %v574_v28  ;;  %v1790_v54 = vadd.f32 %v1357_v37, %v1651_v34  ;;  %v1461_v3 = vpop.eup %1460 }
  0xfc   : > { %v695_v17 = vadd.f32 -0.28449672, %v679_v4  ;;  %v708_v31 = vmul.f32 %v1693_v14, %v692_v10  ;;  %v726_v50 = vadd.f32 0.2548296, %v710_v25  ;;  %v635_v60 = vadd.f32 -1.4531521, %v619_v33  ;;  %v1463_v37 = vpop.eup %1462 }
  0xfd   : > { %v677_v32 = vmul.f32 %v1715_v36, %v661_v13  ;;  %1464 = vrcp.f32 %v588_v48  ;;  %v1793_v2 = vmul.f32 0.5, %v1676_v1  ;;  %v666_v6 = vadd.f32 1.4214138, %v650_v45 }
  0xfe   : > { %v711_v43 = vmul.f32 %v1702_v24, %v695_v17  ;;  %v724_v62 = vadd.f32 0.2548296, %v708_v31  ;;  %1466 = vpow2.f32 %v790_v59  ;;  %v584_v10 = vadd.f32 1.0, %v568_v40 }
  0xff   : > { %v693_v55 = vadd.f32 -0.28449672, %v677_v32  ;;  %v776_v13 = vmul.f32 %v760_v42, %v552_v16  ;;  %v742_v17 = vmul.f32 %v1685_v8, %v726_v50  ;;  %v779_v18 = vmul.f32 %v763_v46, %v1683_v7 }
 0x100   : > { %v727_v4 = vadd.f32 0.2548296, %v711_v43  ;;  %v761_v25 = vsub.f32 0.0, %v553_v51  ;;  %1468 = vrcp.f32 %v590_v52  ;;  %v740_v28 = vmul.f32 %v1693_v14, %v724_v62 }
 0x101   : > { %v709_v59 = vmul.f32 %v1715_v36, %v693_v55  ;;  %v651_v1 = vmul.f32 %v1768_v23, %v635_v60  ;;  %v1802_v31 = vmul.f32 0.70710677, %v1790_v54  ;;  %v1805_v32 = vsel %vm523_vm6, 1.0, %v1534_v19 }
 0x102   : > { %v1808_v16 = vmul.f32 0.5, %v1747_v63  ;;  %v569_v8 = vmul.f32 0.3275911, %v553_v51  ;;  %v1811_v7 = vadd.f32 %v1651_v34, %v456_v57  ;;  %v743_v14 = vmul.f32 %v1702_v24, %v727_v4 }
 0x103   : > { %v682_v33 = vmul.f32 %v1742_v58, %v666_v6  ;;  %1470 = vpow2.f32 %v800_v61  ;;  %v796_v35 = vmul.f32 1.442695, %v776_v13  ;;  %v822_v39 = vmul.f32 %v1459_v0, %v742_v17 }
 0x104   : > { %1472 = vrcp.f32 %v584_v10  ;;  %v802_v40 = vmul.f32 1.442695, %v779_v18  ;;  %v777_v42 = vmul.f32 %v761_v25, %v553_v51  ;;  %v820_v43 = vmul.f32 %v1461_v3, %v740_v28  ;;  %v1360_v51 = vpop.f32.mrf.mxu0 }
 0x105   : > { %v725_v45 = vadd.f32 0.2548296, %v709_v59  ;;  %v667_v46 = vadd.f32 1.4214138, %v651_v1  ;;  %v1816_v63 = vand.u32 2147483647, %v1802_v31  ;;  %v823_v62 = vmul.f32 %v1463_v37, %v743_v14 }
 0x106   : > { %v585_v48 = vadd.f32 1.0, %v569_v8  ;;  %v766_v50 = vsub.f32 0.0, %v1755_v9  ;;  %v764_v24 = vsub.f32 0.0, %v1766_v22  ;;  %v1821_v52 = vmul.f32 0.70710677, %v1811_v7 }
 0x107   : > { %v698_v55 = vadd.f32 -0.28449672, %v682_v33  ;;  %1474 = vpow2.f32 %v796_v35  ;;  %v575_v60 = vmul.f32 0.3275911, %v1816_v63  ;;  %v838_v0 = vsub.f32 1.0, %v822_v39 }
 0x108   : > { %1476 = vpow2.f32 %v802_v40  ;;  %v798_v61 = vmul.f32 1.442695, %v777_v42  ;;  %v836_v4 = vsub.f32 1.0, %v820_v43  ;;  %v741_v6 = vmul.f32 %v1715_v36, %v725_v45  ;;  %v469_v36 = vpop.f32.mrf.mxu0 }
 0x109   : > { %v683_v10 = vmul.f32 %v1768_v23, %v667_v46  ;;  %v591_v13 = vadd.f32 1.0, %v575_v60  ;;  %1478 = vrcp.f32 %v585_v48  ;;  %v782_v17 = vmul.f32 %v766_v50, %v1755_v9 }
 0x10a   : > { %v1827_v57 = vpop.eup %1464  ;;  %v780_v18 = vmul.f32 %v764_v24, %v1766_v22  ;;  %v1832_v25 = vand.u32 2147483647, %v1821_v52  ;;  %v839_v59 = vsub.f32 1.0, %v823_v62  ;;  %v714_v1 = vmul.f32 %v1742_v58, %v698_v55  ;;  %v1361_v48 = vpop.f32.mrf.mxu0 }
 0x10b   : > { %v1467_v28 = vpop.eup %1466  ;;  %v620_v3 = vmul.f32 1.0614054, %v1827_v57  ;;  %1480 = vrcp.f32 %v591_v13  ;;  %v854_v8 = vmul.f32 %v838_v0, %v1696_v20  ;;  %v1840_v9 = vsel %vm526_vm7, 1.0, %v1534_v19 }
 0x10c   : > { %1482 = vpow2.f32 %v798_v61  ;;  %v573_v22 = vmul.f32 0.3275911, %v1832_v25  ;;  %v852_v33 = vmul.f32 %v836_v4, %v1699_v21  ;;  %v821_v35 = vmul.f32 %v1467_v28, %v741_v6 }
 0x10d   : > { %v1843_v14 = vpop.eup %1468  ;;  %v699_v37 = vadd.f32 -0.28449672, %v683_v10  ;;  %v1847_v39 = vadd.f32 %v1360_v51, %v1651_v34  ;;  %v808_v40 = vmul.f32 1.442695, %v782_v17  ;;  %v1850_v20 = vmul.f32 0.5, %v1727_v44 }
 0x10e   : > { %v589_v49 = vadd.f32 1.0, %v573_v22  ;;  %v855_v42 = vmul.f32 %v839_v59, %v1722_v41  ;;  %v730_v43 = vadd.f32 0.2548296, %v714_v1  ;;  %v636_v45 = vadd.f32 -1.4531521, %v620_v3 }
 0x10f   : > { %v804_v46 = vmul.f32 1.442695, %v780_v18  ;;  %v622_v21 = vmul.f32 1.0614054, %v1843_v14  ;;  %v1856_v24 = vmul.f32 0.70710677, %v1847_v39  ;;  %v1859_v62 = vadd.f32 %v1651_v34, %v469_v36 }
 0x110   : > { %v1471_v50 = vpop.eup %1470  ;;  %1484 = vrcp.f32 %v589_v49  ;;  %v870_v55 = vadd.f32 1.0, %v854_v8  ;;  %v868_v60 = vadd.f32 1.0, %v852_v33  ;;  %v837_v51 = vsub.f32 1.0, %v821_v35 }
 0x111   : > { %v1861_v44 = vpop.eup %1472  ;;  %v715_v41 = vmul.f32 %v1768_v23, %v699_v37  ;;  %1486 = vpow2.f32 %v808_v40  ;;  %v1867_v0 = vsel %vm524_vm8, 1.0, %v1534_v19  ;;  %v1870_v61 = vand.u32 2147483647, %v1856_v24  ;;  %v472_v37 = vpop.f32.mrf.mxu0 }
 0x112   : > { %v1873_v4 = vadd.f32 %v1361_v48, %v1651_v34  ;;  %v871_v6 = vadd.f32 1.0, %v855_v42  ;;  %v746_v10 = vmul.f32 %v1742_v58, %v730_v43  ;;  %v652_v13 = vmul.f32 %v1827_v57, %v636_v45 }
 0x113   : > { %vm527_vm9 = vcmp.ge.f32.partialorder %v1802_v31, 0.0  ;;  %v638_v18 = vadd.f32 -1.4531521, %v622_v21  ;;  %1488 = vpow2.f32 %v804_v46  ;;  %v578_v53 = vmul.f32 0.3275911, %v1870_v61 }
 0x114   : > { %v1878_v17 = vpop.eup %1474  ;;  %v1882_v28 = vmul.f32 0.70710677, %v1859_v62  ;;  %v1885_v1 = vmul.f32 %v870_v55, %v1689_v11  ;;  %v1888_v3 = vmul.f32 %v868_v60, %v1691_v12  ;;  %v853_v58 = vmul.f32 %v837_v51, %v1737_v47 }
 0x115   : > { %v1477_v59 = vpop.eup %1476  ;;  %v731_v36 = vadd.f32 0.2548296, %v715_v41  ;;  %v765_v8 = vsub.f32 0.0, %v1832_v25  ;;  %v594_v22 = vadd.f32 1.0, %v578_v53  ;;  %v1896_v35 = vmul.f32 0.70710677, %v1873_v4 }
 0x116   : > { %v1893_v33 = vand.u32 2147483647, %v1882_v28  ;;  %v1898_v40 = vpop.eup %1478  ;;  %v1901_v11 = vmul.f32 %v871_v6, %v1705_v26  ;;  %v826_v12 = vmul.f32 %v1471_v50, %v746_v10  ;;  %v668_v49 = vadd.f32 1.4214138, %v652_v13 }
 0x117   : > { %v1906_v47 = vsel %vm527_vm9, 1.0, %v1534_v19  ;;  %v654_v43 = vmul.f32 %v1843_v14, %v638_v18  ;;  %v767_v45 = vsub.f32 0.0, %v1816_v63  ;;  %1490 = vrcp.f32 %v594_v22 }
 0x118   : > { %v1908_v42 = vpop.eup %1480  ;;  %v576_v46 = vmul.f32 0.3275911, %v1893_v33  ;;  %v747_v26 = vmul.f32 %v1768_v23, %v731_v36  ;;  %v1918_v21 = vmul.f32 0.5, %v1811_v7  ;;  %v1921_v31 = vadd.f32 %v1651_v34, %v472_v37 }
 0x119   : > { %v1913_v48 = vpop.eup %1482  ;;  %v623_v50 = vmul.f32 1.0614054, %v1908_v42  ;;  %v869_v55 = vadd.f32 1.0, %v853_v58  ;;  %v781_v60 = vmul.f32 %v765_v8, %v1832_v25  ;;  %v1925_v41 = vand.u32 2147483647, %v1896_v35 }
 0x11a   : > { %v592_v51 = vadd.f32 1.0, %v576_v46  ;;  %v842_v6 = vsub.f32 1.0, %v826_v12  ;;  %v684_v10 = vmul.f32 %v1827_v57, %v668_v49  ;;  %vm525_vm10 = vcmp.ge.f32.partialorder %v1821_v52, 0.0 }
 0x11b   : > { %v639_v13 = vadd.f32 -1.4531521, %v623_v50  ;;  %v670_v23 = vadd.f32 1.4214138, %v654_v43  ;;  %v783_v7 = vmul.f32 %v767_v45, %v1816_v63  ;;  %v579_v34 = vmul.f32 0.3275911, %v1925_v41 }
 0x11c   : > { %1492 = vrcp.f32 %v592_v51  ;;  %v827_v53 = vmul.f32 %v1477_v59, %v747_v26  ;;  %v770_v58 = vsub.f32 0.0, %v1870_v61  ;;  %v1936_v36 = vmul.f32 0.70710677, %v1921_v31 }
 0x11d   : > { %v1931_v18 = vpop.eup %1484  ;;  %v655_v25 = vmul.f32 %v1908_v42, %v639_v13  ;;  %v885_v8 = vmul.f32 %v869_v55, %v1709_v29  ;;  %v806_v37 = vmul.f32 1.442695, %v781_v60  ;;  %v595_v12 = vadd.f32 1.0, %v579_v34 }
 0x11e   : > { %v621_v22 = vmul.f32 1.0614054, %v1931_v18  ;;  %v1940_v63 = vpop.eup %1486  ;;  %v917_v49 = vpack.c.bf16 %v1901_v11, %v1885_v1  ;;  %v700_v43 = vadd.f32 -0.28449672, %v684_v10  ;;  %v1945_v45 = vand.u32 2147483647, %v1936_v36 }
 0x11f   : > { %v671_v59 = vadd.f32 1.4214138, %v655_v25  ;;  %v686_v46 = vmul.f32 %v1843_v14, %v670_v23  ;;  %v810_v26 = vmul.f32 1.442695, %v783_v7  ;;  %1494 = vrcp.f32 %v595_v12 }
 0x120   : > { %v637_v50 = vadd.f32 -1.4531521, %v621_v22  ;;  %v1948_v29 = vpop.eup %1488  ;;  %v1951_v55 = vmul.f32 %v842_v6, %v1782_v38  ;;  %v843_v60 = vsub.f32 1.0, %v827_v53  ;;  %v786_v51 = vmul.f32 %v770_v58, %v1870_v61 }
 0x121   : > { %v577_v1 = vmul.f32 0.3275911, %v1945_v45  ;;  %v1958_v11 = vsel %vm525_vm10, 1.0, %v1534_v19  ;;  %1496 = vpow2.f32 %v806_v37  ;;  %v916_v13 = vpack.c.bf16 %v885_v8, %v1888_v3 }
 0x122   : > { %v653_v10 = vmul.f32 %v1931_v18, %v637_v50  ;;  %v716_v23 = vmul.f32 %v1827_v57, %v700_v43  ;;  %v687_v38 = vmul.f32 %v1908_v42, %v671_v59  ;;  %v768_v6 = vsub.f32 0.0, %v1893_v33 }
 0x123   : > { %v593_v7 = vadd.f32 1.0, %v577_v1  ;;  %v702_v61 = vadd.f32 -0.28449672, %v686_v46  ;;  %1498 = vpow2.f32 %v810_v26  ;;  %1378 = vmatprep.mubr.bf16.mxu0 %v916_v13  ;;  %v616_v52 = vmul.f32 1.0614054, %v1861_v44 }
 0x124   : > { %v669_v34 = vadd.f32 1.4214138, %v653_v10  ;;  %v1966_v53 = vpop.eup %1490  ;;  %v859_v25 = vmul.f32 %v843_v60, %v1805_v32  ;;  %v816_v58 = vmul.f32 1.442695, %v786_v51  ;;  %v771_v3 = vsub.f32 0.0, %v1925_v41  ;;  %1379 = vmatmul.mubr.bf16.vlgmr.msra.gmra.mxu0 %v917_v49 }
 0x125   : > { %1500 = vrcp.f32 %v593_v7  ;;  %v626_v22 = vmul.f32 1.0614054, %v1966_v53  ;;  %v617_v37 = vmul.f32 1.0614054, %v1898_v40  ;;  %v632_v12 = vadd.f32 -1.4531521, %v616_v52 }
 0x126   : > { %v685_v8 = vmul.f32 %v1931_v18, %v669_v34  ;;  %v732_v43 = vadd.f32 0.2548296, %v716_v23  ;;  %v703_v59 = vadd.f32 -0.28449672, %v687_v38  ;;  %v784_v46 = vmul.f32 %v768_v6, %v1893_v33 }
 0x127   : > { %v642_v50 = vadd.f32 -1.4531521, %v626_v22  ;;  %v633_v1 = vadd.f32 -1.4531521, %v617_v37  ;;  %v648_v32 = vmul.f32 %v1861_v44, %v632_v12  ;;  %v1535_v60 = vmov 0.0  }
 0x128   : > { %v701_v26 = vadd.f32 -0.28449672, %v685_v8  ;;  %301 = vst.msk [vmem:[#allocation2 + $0x10] sm:$0xff] %vm298_vm0, %v1535_v60  ;;  %299 = vst.msk [vmem:[#allocation2] sm:$0xff] %vm298_vm0, %v1535_v60  ;;  %v1993_v49 = vadd.f32 1.0, %v859_v25  ;;  %v718_v51 = vmul.f32 %v1843_v14, %v702_v61  ;;  %v787_v10 = vmul.f32 %v771_v3, %v1925_v41 }
 0x129   : > { %300 = vst.msk [vmem:[#allocation2 + $0x8] sm:$0xff] %vm298_vm0, %v1535_v60  ;;  %302 = vst.msk [vmem:[#allocation2 + $0x18] sm:$0xff] %vm298_vm0, %v1535_v60  ;;  %v1991_v33 = vpop.eup %1492  ;;  %v769_v13 = vsub.f32 0.0, %v1945_v45  ;;  %v658_v38 = vmul.f32 %v1966_v53, %v642_v50  ;;  %v649_v7 = vmul.f32 %v1898_v40, %v633_v1  ;;  %v748_v34 = vmul.f32 %v1827_v57, %v732_v43 }
 0x12a   : > { %303 = vst.msk [vmem:[#allocation2 + $0x20] sm:$0xff] %vm298_vm0, %v1535_v60  ;;  %304 = vst.msk [vmem:[#allocation2 + $0x28] sm:$0xff] %vm298_vm0, %v1535_v60  ;;  %v717_v23 = vmul.f32 %v1931_v18, %v701_v26  ;;  %v624_v6 = vmul.f32 1.0614054, %v1991_v33  ;;  %1502 = vpow2.f32 %v816_v58  ;;  %v812_v52 = vmul.f32 1.442695, %v784_v46 }
 0x12b   : > { %305 = vst.msk [vmem:[#allocation2 + $0x30] sm:$0xff] %vm298_vm0, %v1535_v60  ;;  %306 = vst.msk [vmem:[#allocation2 + $0x38] sm:$0xff] %vm298_vm0, %v1535_v60  ;;  %v664_v25 = vadd.f32 1.4214138, %v648_v32  ;;  %v719_v8 = vmul.f32 %v1908_v42, %v703_v59  ;;  %v674_v22 = vadd.f32 1.4214138, %v658_v38  ;;  %v785_v12 = vmul.f32 %v769_v13, %v1945_v45 }
 0x12c   : > { %307 = vst.msk [vmem:[#allocation2 + $0x40] sm:$0xff] %vm298_vm0, %v1535_v60  ;;  %308 = vst.msk [vmem:[#allocation2 + $0x48] sm:$0xff] %vm298_vm0, %v1535_v60  ;;  %v733_v61 = vadd.f32 0.2548296, %v717_v23  ;;  %v640_v41 = vadd.f32 -1.4531521, %v624_v6  ;;  %v2004_v3 = vpop.eup %1494  ;;  %v828_v46 = vmul.f32 %v1948_v29, %v748_v34  ;;  %1504 = vpow2.f32 %v812_v52 }
 0x12d   : > { %309 = vst.msk [vmem:[#allocation2 + $0x50] sm:$0xff] %vm298_vm0, %v1535_v60  ;;  %310 = vst.msk [vmem:[#allocation2 + $0x58] sm:$0xff] %vm298_vm0, %v1535_v60  ;;  %v818_v37 = vmul.f32 1.442695, %v787_v10  ;;  %v665_v26 = vadd.f32 1.4214138, %v649_v7  ;;  %v680_v50 = vmul.f32 %v1861_v44, %v664_v25  ;;  %v690_v57 = vmul.f32 %v1966_v53, %v674_v22 }
 0x12e   : > { %311 = vst.msk [vmem:[#allocation2 + $0x60] sm:$0xff] %vm298_vm0, %v1535_v60  ;;  %312 = vst.msk [vmem:[#allocation2 + $0x68] sm:$0xff] %vm298_vm0, %v1535_v60  ;;  %v749_v1 = vmul.f32 %v1931_v18, %v733_v61  ;;  %v656_v58 = vmul.f32 %v1991_v33, %v640_v41  ;;  %v627_v43 = vmul.f32 1.0614054, %v2004_v3  ;;  %v1497_v59 = vpop.eup %1496  ;;  %v734_v38 = vadd.f32 0.2548296, %v718_v51 }
 0x12f   : > { %313 = vst.msk [vmem:[#allocation2 + $0x70] sm:$0xff] %vm298_vm0, %v1535_v60  ;;  %314 = vst.msk [vmem:[#allocation2 + $0x78] sm:$0xff] %vm298_vm0, %v1535_v60  ;;  %v681_v32 = vmul.f32 %v1898_v40, %v665_v26  ;;  %v696_v45 = vadd.f32 -0.28449672, %v680_v50  ;;  %v735_v60 = vadd.f32 0.2548296, %v719_v8  ;;  %1506 = vpow2.f32 %v818_v37 }
 0x130   : > { %v829_v10 = vmul.f32 %v1497_v59, %v749_v1  ;;  %v672_v13 = vadd.f32 1.4214138, %v656_v58  ;;  %v643_v23 = vadd.f32 -1.4531521, %v627_v43  ;;  %v1499_v18 = vpop.eup %1498  ;;  %v706_v61 = vadd.f32 -0.28449672, %v690_v57 }
 0x131   : > { %v697_v6 = vadd.f32 -0.28449672, %v681_v32  ;;  %v712_v7 = vmul.f32 %v1861_v44, %v696_v45  ;;  %v814_v52 = vmul.f32 1.442695, %v785_v12  ;;  %v844_v50 = vsub.f32 1.0, %v828_v46 }
 0x132   : > { %v2017_v25 = vpop.eup %1500  ;;  %v688_v29 = vmul.f32 %v1991_v33, %v672_v13  ;;  %v659_v34 = vmul.f32 %v2004_v3, %v643_v23  ;;  %v845_v8 = vsub.f32 1.0, %v829_v10  ;;  %v751_v51 = vmul.f32 %v1908_v42, %v735_v60 }
 0x133   : > { %v625_v22 = vmul.f32 1.0614054, %v2017_v25  ;;  %v713_v41 = vmul.f32 %v1898_v40, %v697_v6  ;;  %v728_v26 = vadd.f32 0.2548296, %v712_v7  ;;  %v750_v58 = vmul.f32 %v1843_v14, %v734_v38 }
 0x134   : > { %v704_v37 = vadd.f32 -0.28449672, %v688_v29  ;;  %v675_v1 = vadd.f32 1.4214138, %v659_v34  ;;  %v722_v32 = vmul.f32 %v1966_v53, %v706_v61  ;;  %1508 = vpow2.f32 %v814_v52 }
 0x135   : > { %v641_v43 = vadd.f32 -1.4531521, %v625_v22  ;;  %v729_v57 = vadd.f32 0.2548296, %v713_v41  ;;  %v744_v59 = vmul.f32 %v1861_v44, %v728_v26  ;;  %v861_v10 = vmul.f32 %v845_v8, %v1958_v11 }
 0x136   : > { %v720_v12 = vmul.f32 %v1991_v33, %v704_v37  ;;  %v691_v45 = vmul.f32 %v2004_v3, %v675_v1  ;;  %v860_v13 = vmul.f32 %v844_v50, %v1867_v0  ;;  %v831_v23 = vmul.f32 %v1499_v18, %v751_v51 }
 0x137   : > { %v657_v46 = vmul.f32 %v2017_v25, %v641_v43  ;;  %v745_v42 = vmul.f32 %v1898_v40, %v729_v57  ;;  %v824_v60 = vmul.f32 %v1878_v17, %v744_v59  ;;  %v1503_v14 = vpop.eup %1502  ;;  %v830_v6 = vmul.f32 %v1940_v63, %v750_v58 }
 0x138   : > { %v736_v44 = vadd.f32 0.2548296, %v720_v12  ;;  %v707_v38 = vadd.f32 -0.28449672, %v691_v45  ;;  %v738_v34 = vadd.f32 0.2548296, %v722_v32  ;;  %v891_v59 = vmul.f32 %v1993_v49, %v1793_v2 }
 0x139   : > { %v673_v7 = vadd.f32 1.4214138, %v657_v46  ;;  %v825_v61 = vmul.f32 %v1913_v48, %v745_v42  ;;  %v840_v29 = vsub.f32 1.0, %v824_v60  ;;  %v536_v17 = vsel %vm520_vm11, 1.0, %v1534_v19  ;;  %v1505_v22 = vpop.eup %1504 }
 0x13a   : > { %v752_v11 = vmul.f32 %v1991_v33, %v736_v44  ;;  %v723_v52 = vmul.f32 %v2004_v3, %v707_v38  ;;  %v877_v40 = vadd.f32 1.0, %v861_v10  ;;  %v876_v63 = vadd.f32 1.0, %v860_v13 }
 0x13b   : > { %v689_v0 = vmul.f32 %v2017_v25, %v673_v7  ;;  %v841_v18 = vsub.f32 1.0, %v825_v61  ;;  %v856_v8 = vmul.f32 %v840_v29, %v536_v17  ;;  %v847_v41 = vsub.f32 1.0, %v831_v23 }
 0x13c   : > { %v739_v26 = vadd.f32 0.2548296, %v723_v52  ;;  %v537_v48 = vsel %vm521_vm12, 1.0, %v1534_v19  ;;  %v832_v33 = vmul.f32 %v1505_v22, %v752_v11  ;;  %v1507_v1 = vpop.eup %1506  ;;  %v874_v56 = vadd.f32 1.0, %v1951_v55 }
 0x13d   : > { %v705_v50 = vadd.f32 -0.28449672, %v689_v0  ;;  %v857_v51 = vmul.f32 %v841_v18, %v537_v48  ;;  %v872_v37 = vadd.f32 1.0, %v856_v8  ;;  %v846_v58 = vsub.f32 1.0, %v830_v6 }
 0x13e   : > { %v754_v43 = vmul.f32 %v1966_v53, %v738_v34  ;;  %v755_v57 = vmul.f32 %v2004_v3, %v739_v26  ;;  %v893_v32 = vmul.f32 %v877_v40, %v1918_v21  ;;  %v892_v45 = vmul.f32 %v876_v63, %v1850_v20 }
 0x13f   : > { %v721_v27 = vmul.f32 %v2017_v25, %v705_v50  ;;  %v873_v12 = vadd.f32 1.0, %v857_v51  ;;  %v863_v10 = vmul.f32 %v847_v41, %v1906_v47  ;;  %vm528_vm13 = vcmp.ge.f32.partialorder %v1882_v28, 0.0 }
 0x140   : > { %v835_v55 = vmul.f32 %v1507_v1, %v755_v57  ;;  %v848_v46 = vsub.f32 1.0, %v832_v33  ;;  %v888_v53 = vmul.f32 %v872_v37, %v1762_v5  ;;  %v890_v2 = vmul.f32 %v874_v56, %v1758_v15  ;;  %v903_v1 = vld [vmem:[#allocation2 + $0x18] sm:$0xff] }
 0x141   : > { %v737_v42 = vadd.f32 0.2548296, %v721_v27  ;;  %v889_v3 = vmul.f32 %v873_v12, %v1808_v16  ;;  %v862_v21 = vmul.f32 %v846_v58, %v1840_v9  ;;  %v834_v49 = vmul.f32 %v1503_v14, %v754_v43  ;;  %v1509_v60 = vpop.eup %1508  ;;  %v901_v58 = vld [vmem:[#allocation2 + $0x8] sm:$0xff] }
 0x142   : > { %v544_v13 = vsel %vm528_vm13, 1.0, %v1534_v19  ;;  %v920_v23 = vpack.c.bf16 %v893_v32, %v892_v45  ;;  %v879_v28 = vadd.f32 1.0, %v863_v10  ;;  %vm531_vm14 = vcmp.ge.f32.partialorder %v1896_v35, 0.0 }
 0x143   : > { %v753_v20 = vmul.f32 %v2017_v25, %v737_v42  ;;  %v918_v47 = vpack.c.bf16 %v889_v3, %v888_v53  ;;  %v851_v44 = vsub.f32 1.0, %v835_v55  ;;  %v919_v38 = vpack.c.bf16 %v891_v59, %v890_v2  ;;  %v2079_v59 = vld [vmem:[%s2162_s4] ss:$0 sm:$0xff]  ;;  %v906_v53 = vld [vmem:[#allocation2 + $0x30] sm:$0xff] }
 0x144   : > { %v864_v5 = vmul.f32 %v848_v46, %v544_v13  ;;  %vm529_vm15 = vcmp.ge.f32.partialorder %v1936_v36, 0.0  ;;  %v878_v15 = vadd.f32 1.0, %v862_v21  ;;  %v495_v9 = vmul.f32 0.5, %v1790_v54  ;;  %v904_v2 = vld [vmem:[#allocation2 + $0x20] sm:$0xff] }
 0x145   : > { %v833_v16 = vmul.f32 %v1509_v60, %v753_v20  ;;  %1382 = vmatprep.mubr.bf16.mxu1 %v918_v47  ;;  %vm530_vm1 = vcmp.ge.f32.partialorder %v1856_v24, 0.0  ;;  %v850_v14 = vsub.f32 1.0, %v834_v49  ;;  %v547_v25 = vsel %vm531_vm14, 1.0, %v1534_v19  ;;  %v907_v60 = vld [vmem:[#allocation2 + $0x38] sm:$0xff]  ;;  %v905_v47 = vld [vmem:[#allocation2 + $0x28] sm:$0xff] }
 0x146   : > { %1383 = vmatmul.mubr.bf16.vlgmr.msra.gmra.mxu1 %v919_v38  ;;  %v494_v35 = vmul.f32 0.5, %v1712_v30  ;;  %v895_v7 = vmul.f32 %v879_v28, %v495_v9  ;;  %v867_v61 = vmul.f32 %v851_v44, %v547_v25  ;;  %v545_v29 = vsel %vm529_vm15, 1.0, %v1534_v19  ;;  %v910_v44 = vld [vmem:[#allocation2 + $0x50] sm:$0xff]  ;;  %v911_v25 = vld [vmem:[#allocation2 + $0x58] sm:$0xff] }
 0x147   : > { %v849_v6 = vsub.f32 1.0, %v833_v16  ;;  %1386 = vmatprep.mubr.bf16.mxu1 %v920_v23  ;;  %v546_v36 = vsel %vm530_vm1, 1.0, %v1534_v19  ;;  %v880_v34 = vadd.f32 1.0, %v864_v5  ;;  %v496_v24 = vmul.f32 0.5, %v1859_v62  ;;  %v902_v62 = vld [vmem:[#allocation2 + $0x10] sm:$0xff]  ;;  %v908_v16 = vld [vmem:[#allocation2 + $0x40] sm:$0xff] }
 0x148   : > { %v894_v52 = vmul.f32 %v878_v15, %v494_v35  ;;  %v866_v54 = vmul.f32 %v850_v14, %v546_v36  ;;  %v497_v17 = vmul.f32 0.5, %v1921_v31  ;;  %v883_v0 = vadd.f32 1.0, %v867_v61  ;;  %v900_v31 = vld [vmem:[#allocation2] sm:$0xff] }
 0x149   : > { %v865_v11 = vmul.f32 %v849_v6, %v545_v29  ;;  %v896_v8 = vmul.f32 %v880_v34, %v496_v24  ;;  %v499_v63 = vmul.f32 0.5, %v1873_v4  ;;  %v498_v19 = vmul.f32 0.5, %v1847_v39  ;;  %v909_v29 = vld [vmem:[#allocation2 + $0x48] sm:$0xff] }
 0x14a   : > { %v921_v18 = vpack.c.bf16 %v895_v7, %v894_v52  ;;  %v882_v30 = vadd.f32 1.0, %v866_v54  ;;  %v914_v54 = vld [vmem:[#allocation2 + $0x70] sm:$0xff] }
 0x14b   : > { %v881_v40 = vadd.f32 1.0, %v865_v11  ;;  %v899_v26 = vmul.f32 %v883_v0, %v499_v63 }
 0x14c   : > { %v898_v48 = vmul.f32 %v882_v30, %v498_v19 }
 0x14d   : > { %v897_v22 = vmul.f32 %v881_v40, %v497_v17 }
 0x14e   : > { %1387 = vmatmul.mubr.bf16.gmra.mxu1 %v921_v18  ;;  %v923_v33 = vpack.c.bf16 %v899_v26, %v898_v48  ;;  %v912_v18 = vld [vmem:[#allocation2 + $0x60] sm:$0xff] }
 0x14f   : > { %v922_v41 = vpack.c.bf16 %v897_v22, %v896_v8 }
 0x151   : > { %1390 = vmatprep.mubr.bf16.mxu1 %v922_v41  ;;  %v915_v41 = vld [vmem:[#allocation2 + $0x78] sm:$0xff] }
 0x156   : > { %1391 = vmatmul.mubr.bf16.gmra.mxu1 %v923_v33 }
 0x1e4   : > { %v1380_v50 = vpop.f32.mrf.mxu0 }
 0x1e5   : > { %v1087_v51 = vadd.f32 %v1380_v50, %v902_v62  ;;  %v913_v62 = vld [vmem:[#allocation2 + $0x68] sm:$0xff] }
 0x1e6   : > { %v1022_v37 = vpop.f32.mrf.mxu0 }
 0x1e7   : > { %1103 = vst.msk [vmem:[#allocation2 + $0x10] sm:$0xff] %vm298_vm0, %v1087_v51  ;;  %v1085_v56 = vadd.f32 %v1022_v37, %v900_v31 }
 0x1e8   : > { %v1381_v4 = vpop.f32.mrf.mxu0 }
 0x1e9   : > { %1101 = vst.msk [vmem:[#allocation2] sm:$0xff] %vm298_vm0, %v1085_v56  ;;  %v1088_v39 = vadd.f32 %v1381_v4, %v903_v1 }
 0x1ea   : > { %v1025_v43 = vpop.f32.mrf.mxu0 }
 0x1eb   : > { %1104 = vst.msk [vmem:[#allocation2 + $0x18] sm:$0xff] %vm298_vm0, %v1088_v39  ;;  %v1086_v57 = vadd.f32 %v1025_v43, %v901_v58 }
 0x1ed   : > { %1102 = vst.msk [vmem:[#allocation2 + $0x8] sm:$0xff] %vm298_vm0, %v1086_v57 }
 0x1ee   : > { %v1122_v32 = vld [vmem:[#allocation2 + $0x10] sm:$0xff] }
 0x1ef   : > { %v1145_v27 = vadd.f32 %v2079_v59, %v1122_v32 }
 0x1f0   : > { %v1120_v12 = vld [vmem:[#allocation2] sm:$0xff] }
 0x1f1   : > { %1161 = vst.msk [vmem:[%s2087_s8 + $0x10] sm:$0xff] %vm298_vm0, %v1145_v27  ;;  %v1143_v45 = vadd.f32 %v2079_v59, %v1120_v12 }
 0x1f2   : > { %v1123_v10 = vld [vmem:[#allocation2 + $0x18] sm:$0xff] }
 0x1f3   : > { %1159 = vst.msk [vmem:[%s2087_s8] sm:$0xff] %vm298_vm0, %v1143_v45  ;;  %v1146_v55 = vadd.f32 %v2079_v59, %v1123_v10 }
 0x1f4   : > { %v1121_v46 = vld [vmem:[#allocation2 + $0x8] sm:$0xff] }
 0x1f5   : > { %1162 = vst.msk [vmem:[%s2087_s8 + $0x18] sm:$0xff] %vm298_vm0, %v1146_v55  ;;  %v1144_v42 = vadd.f32 %v2079_v59, %v1121_v46 }
 0x1f7   : > { %1160 = vst.msk [vmem:[%s2087_s8 + $0x8] sm:$0xff] %vm298_vm0, %v1144_v42 }
 0x206   : > { %v1384_v3 = vpop.f32.mrf.mxu1 }
 0x207   : > { %v1091_v21 = vadd.f32 %v1384_v3, %v906_v53 }
 0x208   : > { %v1038_v49 = vpop.f32.mrf.mxu1 }
 0x209   : > { %1107 = vst.msk [vmem:[#allocation2 + $0x30] sm:$0xff] %vm298_vm0, %v1091_v21  ;;  %v1089_v13 = vadd.f32 %v1038_v49, %v904_v2 }
 0x20a   : > { %v1385_v20 = vpop.f32.mrf.mxu1 }
 0x20b   : > { %1105 = vst.msk [vmem:[#allocation2 + $0x20] sm:$0xff] %vm298_vm0, %v1089_v13  ;;  %v1092_v23 = vadd.f32 %v1385_v20, %v907_v60 }
 0x20c   : > { %v1041_v28 = vpop.f32.mrf.mxu1 }
 0x20d   : > { %1108 = vst.msk [vmem:[#allocation2 + $0x38] sm:$0xff] %vm298_vm0, %v1092_v23  ;;  %v1090_v38 = vadd.f32 %v1041_v28, %v905_v47 }
 0x20e   : > { %v1388_v5 = vpop.f32.mrf.mxu1 }
 0x20f   : > { %1106 = vst.msk [vmem:[#allocation2 + $0x28] sm:$0xff] %vm298_vm0, %v1090_v38  ;;  %v1095_v15 = vadd.f32 %v1388_v5, %v910_v44 }
 0x210   : > { %v1126_v9 = vld [vmem:[#allocation2 + $0x30] sm:$0xff]  ;;  %v1054_v14 = vpop.f32.mrf.mxu1 }
 0x211   : > { %v1149_v6 = vadd.f32 %v2079_v59, %v1126_v9  ;;  %1111 = vst.msk [vmem:[#allocation2 + $0x50] sm:$0xff] %vm298_vm0, %v1095_v15  ;;  %v1093_v35 = vadd.f32 %v1054_v14, %v908_v16 }
 0x212   : > { %v1124_v7 = vld [vmem:[#allocation2 + $0x20] sm:$0xff]  ;;  %v1389_v61 = vpop.f32.mrf.mxu1 }
 0x213   : > { %1165 = vst.msk [vmem:[%s2087_s8 + $0x30] sm:$0xff] %vm298_vm0, %v1149_v6  ;;  %v1147_v36 = vadd.f32 %v2079_v59, %v1124_v7  ;;  %1109 = vst.msk [vmem:[#allocation2 + $0x40] sm:$0xff] %vm298_vm0, %v1093_v35  ;;  %v1096_v34 = vadd.f32 %v1389_v61, %v911_v25 }
 0x214   : > { %v1127_v11 = vld [vmem:[#allocation2 + $0x38] sm:$0xff]  ;;  %v1057_v52 = vpop.f32.mrf.mxu1 }
 0x215   : > { %1163 = vst.msk [vmem:[%s2087_s8 + $0x20] sm:$0xff] %vm298_vm0, %v1147_v36  ;;  %v1150_v24 = vadd.f32 %v2079_v59, %v1127_v11  ;;  %1112 = vst.msk [vmem:[#allocation2 + $0x58] sm:$0xff] %vm298_vm0, %v1096_v34  ;;  %v1094_v17 = vadd.f32 %v1057_v52, %v909_v29 }
 0x216   : > { %v1125_v40 = vld [vmem:[#allocation2 + $0x28] sm:$0xff]  ;;  %v1392_v0 = vpop.f32.mrf.mxu1 }
 0x217   : > { %1166 = vst.msk [vmem:[%s2087_s8 + $0x38] sm:$0xff] %vm298_vm0, %v1150_v24  ;;  %v1148_v8 = vadd.f32 %v2079_v59, %v1125_v40  ;;  %1110 = vst.msk [vmem:[#allocation2 + $0x48] sm:$0xff] %vm298_vm0, %v1094_v17  ;;  %v1099_v22 = vadd.f32 %v1392_v0, %v914_v54 }
 0x218   : > { %v1130_v30 = vld [vmem:[#allocation2 + $0x50] sm:$0xff]  ;;  %v1070_v63 = vpop.f32.mrf.mxu1 }
 0x219   : > { %1164 = vst.msk [vmem:[%s2087_s8 + $0x28] sm:$0xff] %vm298_vm0, %v1148_v8  ;;  %v1153_v19 = vadd.f32 %v2079_v59, %v1130_v30  ;;  %1115 = vst.msk [vmem:[#allocation2 + $0x70] sm:$0xff] %vm298_vm0, %v1099_v22  ;;  %v1097_v26 = vadd.f32 %v1070_v63, %v912_v18 }
 0x21a   : > { %v1128_v48 = vld [vmem:[#allocation2 + $0x40] sm:$0xff]  ;;  %v1393_v33 = vpop.f32.mrf.mxu1 }
 0x21b   : > { %1169 = vst.msk [vmem:[%s2087_s8 + $0x50] sm:$0xff] %vm298_vm0, %v1153_v19  ;;  %v1151_v50 = vadd.f32 %v2079_v59, %v1128_v48  ;;  %1113 = vst.msk [vmem:[#allocation2 + $0x60] sm:$0xff] %vm298_vm0, %v1097_v26  ;;  %v1100_v31 = vadd.f32 %v1393_v33, %v915_v41 }
 0x21c   : > { %v1131_v51 = vld [vmem:[#allocation2 + $0x58] sm:$0xff]  ;;  %v1073_v37 = vpop.f32.mrf.mxu1 }
 0x21d   : > { %1167 = vst.msk [vmem:[%s2087_s8 + $0x40] sm:$0xff] %vm298_vm0, %v1151_v50  ;;  %v1154_v1 = vadd.f32 %v2079_v59, %v1131_v51  ;;  %1116 = vst.msk [vmem:[#allocation2 + $0x78] sm:$0xff] %vm298_vm0, %v1100_v31  ;;  %v1098_v56 = vadd.f32 %v1073_v37, %v913_v62 }
 0x21e   : > { %v1129_v4 = vld [vmem:[#allocation2 + $0x48] sm:$0xff] }
 0x21f   : > { %1170 = vst.msk [vmem:[%s2087_s8 + $0x58] sm:$0xff] %vm298_vm0, %v1154_v1  ;;  %v1152_v58 = vadd.f32 %v2079_v59, %v1129_v4  ;;  %1114 = vst.msk [vmem:[#allocation2 + $0x68] sm:$0xff] %vm298_vm0, %v1098_v56 }
 0x220   : > { %v1134_v39 = vld [vmem:[#allocation2 + $0x70] sm:$0xff] }
 0x221   : > { %1168 = vst.msk [vmem:[%s2087_s8 + $0x48] sm:$0xff] %vm298_vm0, %v1152_v58  ;;  %v1157_v43 = vadd.f32 %v2079_v59, %v1134_v39 }
 0x222   : > { %v1132_v57 = vld [vmem:[#allocation2 + $0x60] sm:$0xff] }
 0x223   : > { %1173 = vst.msk [vmem:[%s2087_s8 + $0x70] sm:$0xff] %vm298_vm0, %v1157_v43  ;;  %v1155_v32 = vadd.f32 %v2079_v59, %v1132_v57 }
 0x224   : > { %v1135_v27 = vld [vmem:[#allocation2 + $0x78] sm:$0xff] }
 0x225   : > { %1171 = vst.msk [vmem:[%s2087_s8 + $0x60] sm:$0xff] %vm298_vm0, %v1155_v32  ;;  %v1158_v12 = vadd.f32 %v2079_v59, %v1135_v27 }
 0x226   : > { %v1133_v45 = vld [vmem:[#allocation2 + $0x68] sm:$0xff] }
 0x227   : > { %1174 = vst.msk [vmem:[%s2087_s8 + $0x78] sm:$0xff] %vm298_vm0, %v1158_v12  ;;  %v1156_v10 = vadd.f32 %v2079_v59, %v1133_v45 }
 0x229   : > { %1172 = vst.msk [vmem:[%s2087_s8 + $0x68] sm:$0xff] %vm298_vm0, %v1156_v10 }
 0x22a PF: > { %s15_s20 = sadd.s32 1, %s1532_s20   ;;  %s2164_s18 = smov %s1528_s19 }
 0x22b   : > { %p12_p5 = scmp.ge.s32.totalorder %s15_s20, 4   ;;  %s2165_s19 = smov %s2167_s21 }
 0x22d   :  { %14 = sbr.rel (!%p12_p5) target bundleno = 2 (0x2), region = 87 }

</bundles_post_ra>
